<compile_context>
chip_gen: v5e
topology: v5e:2x2
jax: 0.10.0
libtpu: 0.0.40
codegen_flags: <defaults>
</compile_context>

<pallas_src>
import jax
import jax.numpy as jnp
from jax.experimental import pallas as pl
from jax.experimental.pallas import tpu as pltpu


def _cat_linear_kernel(x_ref, w_ref, b_ref, o_ref):
    # x_ref: (TM, 2)  w_ref: (2, 10)  b_ref: (1, 10)  o_ref: (TM, 10)
    # Upcast to f32 for the FMAs (matches PyTorch f32 Linear; v5e VPU has no
    # native bf16); no-op when inputs are already f32.
    x = x_ref[...].astype(jnp.float32)
    w = w_ref[...].astype(jnp.float32)
    b = b_ref[...].astype(jnp.float32)
    # K=2, N=10: compute on the VPU with two broadcast FMAs instead of a
    # ~0.06%-utilized MXU push (frees the vector-extended slot).
    acc = x[:, 0:1] * w[0:1, :] + x[:, 1:2] * w[1:2, :] + b
    o_ref[...] = acc.astype(o_ref.dtype)


def cat_linear(x, w_cat, b_cat, *, tm=4096):
    """x: (M, 2), w_cat: (2, 10), b_cat: (1, 10) or (10,) -> (M, 10)."""
    M, K = x.shape
    N = w_cat.shape[1]
    assert w_cat.shape[0] == K
    assert tm % 8 == 0, "batch tile must keep the (8,128) sublane alignment"

    if b_cat.ndim == 1:  # prepare_params already hoists this reshape
        b_cat = b_cat.reshape(1, N)

    # Single full-extent block for small M (full-extent dims are always legal,
    # no sublane-divisibility needed); otherwise fixed tm tiles with Mosaic's
    # boundary clipping handling the ragged last tile.
    tm_eff = M if M <= tm else tm
    grid_m = pl.cdiv(M, tm_eff)

    # VMEM budget: x and out blocks are lane-padded to 128 lanes -> ~tm*512 B
    # each, double-buffered.  Leave slack; cap below the v7x physical 64 MiB.
    vmem_need = 4 * tm_eff * 512 + (2 << 20)
    vmem_limit = min(max(vmem_need, 16 << 20), 56 << 20)

    itemsize = jnp.dtype(x.dtype).itemsize
    cost = pl.CostEstimate(
        flops=4 * M * N,
        transcendentals=0,
        bytes_accessed=(M * K + M * N + K * N + N) * itemsize,
    )

    return pl.pallas_call(
        _cat_linear_kernel,
        out_shape=jax.ShapeDtypeStruct((M, N), x.dtype),
        grid_spec=pltpu.PrefetchScalarGridSpec(
            num_scalar_prefetch=0,
            grid=(grid_m,),
            in_specs=[
                pl.BlockSpec((tm_eff, K), lambda i: (i, 0)),  # stream x tiles
                pl.BlockSpec((K, N), lambda i: (0, 0)),       # weights resident
                pl.BlockSpec((1, N), lambda i: (0, 0)),       # bias resident
            ],
            out_specs=pl.BlockSpec((tm_eff, N), lambda i: (i, 0)),
        ),
        compiler_params=pltpu.CompilerParams(
            # Independent M tiles -> parallel axis (megacore sharding on
            # multi-TC parts; harmless on single-TC v5e/v6e).
            dimension_semantics=("parallel",),
            vmem_limit_bytes=vmem_limit,
        ),
        cost_estimate=cost,
    )(x, w_cat, b_cat)


def prepare_params(params):
    """One-time preprocessing: fuse the two Linear(2,5) branches.

    [x@W1^T + b1 | x@W2^T + b2] == x @ [W1^T | W2^T] + [b1 | b2]  (exact).
    """
    w_cat = jnp.concatenate([params["w1"].T, params["w2"].T], axis=-1)  # (2, 10)
    b_cat = jnp.concatenate([params["b1"], params["b2"]], axis=-1).reshape(1, -1)  # (1, 10)
    return w_cat, b_cat


def model_forward(x, w_cat, b_cat):
    """Reproduces model.forward: returns x3 = cat(Linear1(x), Linear2(x), -1)."""
    x3 = cat_linear(x, w_cat, b_cat)
    # TODO(synk): layers[2] (Linear(10,1)) and ReLU are computed in the PyTorch
    # forward but their results (x4, x5) are unused; forward returns x3, so
    # they are omitted here.
    return x3


def init_params(key):
    """Deterministic init matching the PyTorch module's parameter shapes."""
    k1, k2, k3, k4, k5, k6 = jax.random.split(key, 6)
    # nn.Linear(2, 5): weight (5, 2), bias (5,)
    bound12 = 1.0 / jnp.sqrt(2.0)
    w1 = jax.random.uniform(k1, (5, 2), jnp.float32, -bound12, bound12)
    b1 = jax.random.uniform(k2, (5,), jnp.float32, -bound12, bound12)
    w2 = jax.random.uniform(k3, (5, 2), jnp.float32, -bound12, bound12)
    b2 = jax.random.uniform(k4, (5,), jnp.float32, -bound12, bound12)
    # nn.Linear(10, 1): weight (1, 10), bias (1,)  (dead code, kept for parity)
    bound10 = 1.0 / jnp.sqrt(10.0)
    w3 = jax.random.uniform(k5, (1, 10), jnp.float32, -bound10, bound10)
    b3 = jax.random.uniform(k6, (1,), jnp.float32, -bound10, bound10)
    return {"w1": w1, "b1": b1, "w2": w2, "b2": b2, "w3": w3, "b3": b3}


def _reference(x, params):
    x1 = x @ params["w1"].T + params["b1"]
    x2 = x @ params["w2"].T + params["b2"]
    return jnp.concatenate([x1, x2], axis=-1)


if __name__ == "__main__":
    key = jax.random.PRNGKey(0)
    pkey, xkey, xkey2 = jax.random.split(key, 3)
    params = init_params(pkey)
    w_cat, b_cat = prepare_params(params)

    # Small-shape demo consistent with the module: x is (batch, 2).
    batch = 8
    x = jax.random.normal(xkey, (batch, 2), jnp.float32)
    out = model_forward(x, w_cat, b_cat)
    jax.block_until_ready(out)
    assert out.shape == (batch, 10)
    assert jnp.allclose(out, _reference(x, params), atol=1e-5, rtol=1e-5)

    # Check 2: ragged M that is NOT a multiple of 8, single full-extent block.
    batch2 = 1000
    x_big = jax.random.normal(xkey2, (batch2, 2), jnp.float32)
    out_big = model_forward(x_big, w_cat, b_cat)
    jax.block_until_ready(out_big)
    assert out_big.shape == (batch2, 10)
    ref_big = _reference(x_big, params)
    assert jnp.allclose(out_big, ref_big, atol=1e-5, rtol=1e-5)

    # Check 3: multi-tile grid with a ragged last tile (exercises Mosaic
    # boundary-block clipping on both the x read and the output writeback).
    out_tiled = cat_linear(x_big, w_cat, b_cat, tm=256)
    jax.block_until_ready(out_tiled)
    assert out_tiled.shape == (batch2, 10)
    assert jnp.allclose(out_tiled, ref_big, atol=1e-5, rtol=1e-5)

    print("KERNEL_OK")
</pallas_src>

<mosaic_0001>
module attributes {stable_mosaic.version = 11 : i64} {
  func.func @_cat_linear_kernel(%arg0: i32, %arg1: memref<8x2xf32, #tpu.memory_space<vmem>>, %arg2: memref<2x10xf32, #tpu.memory_space<vmem>>, %arg3: memref<1x10xf32, #tpu.memory_space<vmem>>, %arg4: memref<8x10xf32, #tpu.memory_space<vmem>>) attributes {dimension_semantics = [#tpu.dimension_semantics<parallel>], iteration_bounds = array<i64: 1>, scalar_prefetch = 0 : i64, scratch_operands = 0 : i64, tpu.core_type = #tpu.core_type<tc>, window_params = [{transform_indices = @transform_0, window_bounds = array<i64: 8, 2>}, {pipeline_mode = #tpu.pipeline_mode<synchronous>, transform_indices = @transform_1, window_bounds = array<i64: 2, 10>}, {pipeline_mode = #tpu.pipeline_mode<synchronous>, transform_indices = @transform_2, window_bounds = array<i64: 1, 10>}, {transform_indices = @transform_3, window_bounds = array<i64: 8, 10>}]} {
    %c0 = arith.constant 0 : index
    %c0_0 = arith.constant 0 : index
    %0 = vector.load %arg1[%c0, %c0_0] : memref<8x2xf32, #tpu.memory_space<vmem>>, vector<8x2xf32>
    %c0_1 = arith.constant 0 : index
    %c0_2 = arith.constant 0 : index
    %1 = vector.load %arg2[%c0_1, %c0_2] : memref<2x10xf32, #tpu.memory_space<vmem>>, vector<2x10xf32>
    %c0_3 = arith.constant 0 : index
    %c0_4 = arith.constant 0 : index
    %2 = vector.load %arg3[%c0_3, %c0_4] : memref<1x10xf32, #tpu.memory_space<vmem>>, vector<1x10xf32>
    %3 = vector.extract_strided_slice %0 {offsets = [0, 0], sizes = [8, 1], strides = [1, 1]} : vector<8x2xf32> to vector<8x1xf32>
    %4 = vector.extract_strided_slice %1 {offsets = [0, 0], sizes = [1, 10], strides = [1, 1]} : vector<2x10xf32> to vector<1x10xf32>
    %5 = vector.broadcast %3 : vector<8x1xf32> to vector<8x10xf32>
    %6 = vector.broadcast %4 : vector<1x10xf32> to vector<8x10xf32>
    %7 = arith.mulf %5, %6 : vector<8x10xf32>
    %8 = vector.extract_strided_slice %0 {offsets = [0, 1], sizes = [8, 1], strides = [1, 1]} : vector<8x2xf32> to vector<8x1xf32>
    %9 = vector.extract_strided_slice %1 {offsets = [1, 0], sizes = [1, 10], strides = [1, 1]} : vector<2x10xf32> to vector<1x10xf32>
    %10 = vector.broadcast %8 : vector<8x1xf32> to vector<8x10xf32>
    %11 = vector.broadcast %9 : vector<1x10xf32> to vector<8x10xf32>
    %12 = arith.mulf %10, %11 : vector<8x10xf32>
    %13 = arith.addf %7, %12 : vector<8x10xf32>
    %14 = vector.broadcast %2 : vector<1x10xf32> to vector<8x10xf32>
    %15 = arith.addf %13, %14 : vector<8x10xf32>
    %c0_5 = arith.constant 0 : index
    %c0_6 = arith.constant 0 : index
    %16 = vector.load %arg4[%c0_5, %c0_6] : memref<8x10xf32, #tpu.memory_space<vmem>>, vector<8x10xf32>
    tpu.vector_store %arg4[%c0_5, %c0_6], %15 {strides = array<i32>} : memref<8x10xf32, #tpu.memory_space<vmem>>, vector<8x10xf32>,
    return
  }
  func.func @transform_0(%arg0: i32) -> (i32, i32) {
    %c0_i32 = arith.constant 0 : i32
    %c0_i32_0 = arith.constant 0 : i32
    return %arg0, %c0_i32 : i32, i32
  }
  func.func @transform_1(%arg0: i32) -> (i32, i32) {
    %c0_i32 = arith.constant 0 : i32
    %c0_i32_0 = arith.constant 0 : i32
    %c0_i32_1 = arith.constant 0 : i32
    return %c0_i32, %c0_i32_0 : i32, i32
  }
  func.func @transform_2(%arg0: i32) -> (i32, i32) {
    %c0_i32 = arith.constant 0 : i32
    %c0_i32_0 = arith.constant 0 : i32
    %c0_i32_1 = arith.constant 0 : i32
    return %c0_i32, %c0_i32_0 : i32, i32
  }
  func.func @transform_3(%arg0: i32) -> (i32, i32) {
    %c0_i32 = arith.constant 0 : i32
    %c0_i32_0 = arith.constant 0 : i32
    return %arg0, %c0_i32 : i32, i32
  }
}

</mosaic_0001>

<bundles_post_ra>
// kernel: tpu_custom_call.1
= control target key start
LH: loop header
LB: loop body
LE: loop exit
PB: predicated region body
PF: predicated region fallthrough
CT: control target
= control target key end

     0   :  { %v86_v1 = vmov 0   ;;  %s121_s0 = inlined_call_operand.vmem [shape: f32[8,2], index: 0, kind: input, shape index: {}]   ;;  %s122_s1 = inlined_call_operand.vmem [shape: f32[2,10], index: 1, kind: input, shape index: {}]   ;;  %s123_s2 = inlined_call_operand.vmem [shape: f32[1,10], index: 2, kind: input, shape index: {}]   ;;  %s124_s3 = inlined_call_operand.hbm [shape: f32[8,10], index: 3, kind: output, shape index: {}]  }
   0x1   :  { %v15_v0 = vld [vmem:[%s121_s0] sm:$0xff]  ;;  %57 = vset.pattern.permute.xlu0 %v86_v1 }
   0x2   :  { %8 = vsyncpa [#allocation3], 0  ;;  %20 = vperm.xlu0 %57, %v15_v0   ;;  %v87_v2 = vmov 1   ;;  %v16_v4 = vld [vmem:[%s122_s1] sm:$0x3]  ;;  %s88_s0 = smov [#allocation2]  }
   0x3   :  { %v23_v5 = vperm.slane %v16_v4, 0  ;;  %v29_v6 = vperm.slane %v16_v4, 1  ;;  %v59_v9 = vld [vmem:[%s123_s2] ss:$0 sm:$0xff]  ;;  %s43_s18 = sshll.u32 %s88_s0, 4  ;;  %s45_s21 = sshll.u32 %s124_s3, 4  ;;  %s44_s18 = int_to_ptr.vmem [resolvable:$true] %s43_s18  ;;  %s46_s21 = int_to_ptr.hbm [resolvable:$true] %s45_s21 }
   0x4   :  { %vm36_vm0 = vcmask 80896  }
   0xa   :  { %58 = vset.pattern.permute.xlu0 %v87_v2 }
   0xb   :  { %26 = vperm.xlu0 %58, %v15_v0  }
  0x74   :  { %v21_v3 = vpop.permute.xlu0 %20 }
  0x75   :  { %v24_v8 = vmul.f32 %v23_v5, %v21_v3 }
  0x7d   :  { %v27_v7 = vpop.permute.xlu0 %26 }
  0x7e   :  { %v30_v10 = vmul.f32 %v29_v6, %v27_v7 }
  0x80   :  { %v31_v11 = vadd.f32 %v30_v10, %v24_v8 }
  0x82   :  { %v35_v12 = vadd.f32 %v59_v9, %v31_v11 }
  0x84   :  { %37 = vst.msk [vmem:[#allocation2] sm:$0xff] %vm36_vm0, %v35_v12 }
  0x85   :  { %48 = dma.vmem_to_hbm [thread:$0]  %s44_s18, 128, %s46_s21, [#allocation3]  }
  0x86   :  { %84 = dma.done.wait [#allocation3], 128  }
  0x87   :  { %85 = vsyncadd [#allocation3], 4294967168 }
  0x88   :  { %53 = vsyncpa [#allocation3], 1 }

</bundles_post_ra>
